<compile_context>
chip_gen: v7x
topology: tpu7x:2x2x1
jax: 0.10.0
libtpu: 0.0.40
codegen_flags: <defaults>
</compile_context>

<pallas_src>
import jax
import jax.numpy as jnp
import numpy as np
from jax import lax
from jax.experimental import pallas as pl
from jax.experimental.pallas import tpu as pltpu

# ----------------------- small config consistent with the module -----------------------
B = 2                 # batch
T = 8                 # question length
TOKEN_SIZE = 64       # vocab
WORD_EMBED_SIZE = 32  # __C.WORD_EMBED_SIZE
HIDDEN_SIZE = 32      # __C.HIDDEN_SIZE
ANSWER_SIZE = 16      # answer_size
IMG_C, IMG_H, IMG_W = 4, 16, 16
N_FRCN, D_FRCN = 8, 32
N_GRID, D_GRID = 16, 32
N_BBOX, D_BBOX = 8, 5

PAD_D = 32            # common trailing width small modalities are padded to
OUT_LANES = 128       # lane-dense output width (logits in lanes 0..ANSWER_SIZE-1)

# --- packed activation slab layout: one (B, K_ADAPT) lane-dense row per sample ---
K_IMG = IMG_C * IMG_H * IMG_W            # 1024
K_FRCN = N_FRCN * PAD_D                  # 256
K_GRID = N_GRID * PAD_D                  # 512
K_BBOX = N_BBOX * PAD_D                  # 256
K_ADAPT = K_IMG + K_FRCN + K_GRID + K_BBOX   # 2048

# --- width-32 parameter slab layout (sublane row offsets, all multiples of 8) ---
OFF_TABLE = 0
OFF_ADAPT = OFF_TABLE + TOKEN_SIZE       # 64
OFF_BADAPT = OFF_ADAPT + K_ADAPT         # 2112
ROWS_W32 = OFF_BADAPT + 8                # 2120

# --- width-128 parameter slab layout ---
OFF_WPROJ = 0
OFF_BPROJ = HIDDEN_SIZE                  # 32
ROWS_W128 = OFF_BPROJ + 8                # 40

_vmem = lambda: pl.BlockSpec(memory_space=pltpu.MemorySpace.VMEM)


# ------------------------------- single fused kernel ------------------------------------
def fused_net_kernel(ids_ref, act_ref, w32_ref, w128_ref, out_ref):
    # ---- language path: onehot(ids) @ fused_table  (== lang Linear(Embedding(ids)), folded) --
    # TODO(synk): the real openvqa language backbone (likely an LSTM inside AttentionTeams) is
    # not provided; this exact embedding->linear fold is a stand-in for it.
    ids = ids_ref[...]                                            # (B*T, 1) int32
    n_tok = ids.shape[0]
    iota = lax.broadcasted_iota(jnp.int32, (n_tok, TOKEN_SIZE), 1)
    onehot = (iota == ids).astype(jnp.float32)                    # (B*T, V)
    lang_h = jnp.dot(onehot, w32_ref[OFF_TABLE:OFF_TABLE + TOKEN_SIZE, :],
                     preferred_element_type=jnp.float32)          # (B*T, H)

    # ---- Adapter: ONE matmul over the packed activation slab -------------------------------
    # TODO(synk): Adapter(__C) source is not provided; stand-in = per-modality mean-pool +
    # learned linear fusion, with the pooling and 1/N scaling folded into the packed weight.
    img_feat = (jnp.dot(act_ref[...], w32_ref[OFF_ADAPT:OFF_ADAPT + K_ADAPT, :],
                        preferred_element_type=jnp.float32)
                + w32_ref[OFF_BADAPT:OFF_BADAPT + 1, :])          # (B, H)

    # ---- backbone stand-in: image-guided softmax pooling over own tokens + residual --------
    # TODO(synk): AttentionTeams(__C) source is not provided; stand-in attention pooling.
    bsz = img_feat.shape[0]
    tlen = n_tok // bsz
    scores = lax.dot_general(img_feat, lang_h, (((1,), (1,)), ((), ())),
                             preferred_element_type=jnp.float32)  # (B, B*T)
    b_iota = lax.broadcasted_iota(jnp.int32, (bsz, n_tok), 0)
    t_iota = lax.broadcasted_iota(jnp.int32, (bsz, n_tok), 1)
    seg = (t_iota >= b_iota * tlen) & (t_iota < (b_iota + 1) * tlen)
    rowmax = jnp.max(scores, axis=-1, keepdims=True)              # global row max >= segment max
    p = jnp.where(seg, jnp.exp(scores - rowmax), 0.0)             # one select, no -1e30 fill
    att = p * pl.reciprocal(jnp.sum(p, axis=-1, keepdims=True), approx=True)
    pooled = jnp.dot(att, lang_h, preferred_element_type=jnp.float32)   # (B, H)
    fused = pooled + img_feat

    # ---- proj: lane-dense (B, 128) output (logits in lanes 0..15, zeros elsewhere) ----------
    out_ref[...] = (jnp.dot(fused, w128_ref[OFF_WPROJ:OFF_WPROJ + HIDDEN_SIZE, :],
                            preferred_element_type=jnp.float32)
                    + w128_ref[OFF_BPROJ:OFF_BPROJ + 1, :])       # (B, 128)


# --------------------------------- wrapper / params -------------------------------------
def net_forward(packed, img, frcn_feat, grid_feat, bbox_feat, ques_ix):
    bsz, tlen = ques_ix.shape
    ids = ques_ix.reshape(bsz * tlen, 1).astype(jnp.int32)

    # ONE lane-dense activation slab: [img | frcn | grid | bbox(5->32 zero-pad)] flattened.
    img_flat = img.reshape(bsz, -1)                                            # (B, 1024)
    frcn_flat = frcn_feat.reshape(bsz, -1)                                     # (B, 256)
    grid_flat = grid_feat.reshape(bsz, -1)                                     # (B, 512)
    bbox_flat = jnp.pad(bbox_feat, ((0, 0), (0, 0), (0, PAD_D - bbox_feat.shape[-1]))
                        ).reshape(bsz, -1)                                     # (B, 256)
    act = jnp.concatenate([img_flat, frcn_flat, grid_flat, bbox_flat], axis=-1)  # (B, 2048)

    out128 = pl.pallas_call(
        fused_net_kernel,
        out_shape=jax.ShapeDtypeStruct((bsz, OUT_LANES), jnp.float32),
        in_specs=[_vmem() for _ in range(4)],
        out_specs=_vmem(),
    )(ids, act, packed["w32"], packed["w128"])
    return out128[:, :ANSWER_SIZE]


def init_params(key):
    ks = jax.random.split(key, 7)
    s = 0.02
    return {
        "embedding": jax.random.normal(ks[0], (TOKEN_SIZE, WORD_EMBED_SIZE), jnp.float32) * s,
        "w_img":     jax.random.normal(ks[1], (IMG_C, HIDDEN_SIZE), jnp.float32) * s,
        "w_frcn":    jax.random.normal(ks[2], (D_FRCN, HIDDEN_SIZE), jnp.float32) * s,
        "w_grid":    jax.random.normal(ks[3], (D_GRID, HIDDEN_SIZE), jnp.float32) * s,
        "w_bbox":    jax.random.normal(ks[4], (D_BBOX, HIDDEN_SIZE), jnp.float32) * s,
        "b_adapter": jnp.zeros((HIDDEN_SIZE,), jnp.float32),
        "w_lang":    jax.random.normal(ks[5], (WORD_EMBED_SIZE, HIDDEN_SIZE), jnp.float32) * s,
        "b_lang":    jnp.zeros((HIDDEN_SIZE,), jnp.float32),
        "w_proj":    jax.random.normal(ks[6], (HIDDEN_SIZE, ANSWER_SIZE), jnp.float32) * s,
        "b_proj":    jnp.zeros((ANSWER_SIZE,), jnp.float32),
    }


def pack_params(p):
    """One-time parameter folding & packing (plain JAX, outside the kernel)."""
    h = HIDDEN_SIZE
    # Fold embedding -> lang Linear into a single lookup table (exact for the stand-in).
    fused_table = p["embedding"] @ p["w_lang"] + p["b_lang"][None, :]            # (V, H)

    # Fold the 4 adapter matmuls + mean-pool scalings into ONE (K_ADAPT, H) weight whose row
    # layout matches the flattened activation slab exactly.
    n_sp = IMG_H * IMG_W
    w_img_e = jnp.repeat(p["w_img"], n_sp, axis=0) / n_sp                        # (1024, H)
    w_frcn_e = jnp.tile(p["w_frcn"], (N_FRCN, 1)) / N_FRCN                       # (256, H)
    w_grid_e = jnp.tile(p["w_grid"], (N_GRID, 1)) / N_GRID                       # (512, H)
    w_bbox_p = jnp.pad(p["w_bbox"], ((0, PAD_D - D_BBOX), (0, 0)))               # (32, H)
    w_bbox_e = jnp.tile(w_bbox_p, (N_BBOX, 1)) / N_BBOX                          # (256, H)
    w_adapt = jnp.concatenate([w_img_e, w_frcn_e, w_grid_e, w_bbox_e], axis=0)   # (2048, H)

    # Width-32 slab: [table | w_adapt | b_adapt(+zero pad rows)] stacked along sublanes.
    b_adapt_rows = jnp.concatenate(
        [p["b_adapter"][None, :], jnp.zeros((7, h), jnp.float32)], axis=0)       # (8, H)
    w32 = jnp.concatenate([fused_table, w_adapt, b_adapt_rows], axis=0)          # (2120, 32)
    assert w32.shape == (ROWS_W32, h)

    # Width-128 (lane-dense) slab: proj weight + bias zero-padded to 128 output lanes.
    w_proj128 = jnp.pad(p["w_proj"], ((0, 0), (0, OUT_LANES - ANSWER_SIZE)))     # (32, 128)
    b_proj128 = jnp.pad(p["b_proj"][None, :], ((0, 7), (0, OUT_LANES - ANSWER_SIZE)))  # (8, 128)
    w128 = jnp.concatenate([w_proj128, b_proj128], axis=0)                       # (40, 128)
    assert w128.shape == (ROWS_W128, OUT_LANES)

    return {"w32": w32, "w128": w128}


# ----------------------------- pure-JAX reference (for sanity) --------------------------
def net_reference(p, img, frcn_feat, grid_feat, bbox_feat, ques_ix):
    emb = p["embedding"][ques_ix]                                  # (B, T, E)
    lang_h = emb @ p["w_lang"] + p["b_lang"]                       # (B, T, H)
    img_p = img.reshape(img.shape[0], img.shape[1], -1).mean(-1)   # (B, C)
    frcn_p = frcn_feat.mean(1)
    grid_p = grid_feat.mean(1)
    bbox_p = bbox_feat.mean(1)
    img_feat = (img_p @ p["w_img"] + frcn_p @ p["w_frcn"] + grid_p @ p["w_grid"]
                + bbox_p @ p["w_bbox"] + p["b_adapter"])           # (B, H)
    scores = jnp.einsum("bh,bth->bt", img_feat, lang_h)
    att = jax.nn.softmax(scores, axis=-1)
    pooled = jnp.einsum("bt,bth->bh", att, lang_h)
    fused = pooled + img_feat
    return fused @ p["w_proj"] + p["b_proj"]


# --------------------------------------- main -------------------------------------------
if __name__ == "__main__":
    key = jax.random.PRNGKey(0)
    kp, k1, k2, k3, k4, k5 = jax.random.split(key, 6)

    params = init_params(kp)
    packed = pack_params(params)

    img = jax.random.normal(k1, (B, IMG_C, IMG_H, IMG_W), jnp.float32)        # NCHW
    frcn_feat = jax.random.normal(k2, (B, N_FRCN, D_FRCN), jnp.float32)
    grid_feat = jax.random.normal(k3, (B, N_GRID, D_GRID), jnp.float32)
    bbox_feat = jax.random.normal(k4, (B, N_BBOX, D_BBOX), jnp.float32)
    ques_ix = jax.random.randint(k5, (B, T), 0, TOKEN_SIZE, dtype=jnp.int32)

    fwd = jax.jit(net_forward)
    out = jax.block_until_ready(fwd(packed, img, frcn_feat, grid_feat, bbox_feat, ques_ix))
    assert out.shape == (B, ANSWER_SIZE), out.shape
    assert out.dtype == jnp.float32

    ref = net_reference(params, img, frcn_feat, grid_feat, bbox_feat, ques_ix)
    np.testing.assert_allclose(np.asarray(out), np.asarray(ref), rtol=1e-2, atol=1e-4)

    print("KERNEL_OK")
</pallas_src>

<mosaic_0001>
module attributes {stable_mosaic.version = 11 : i64} {
  func.func @fused_net_kernel(%arg0: memref<16x1xi32, #tpu.memory_space<vmem>>, %arg1: memref<2x2048xf32, #tpu.memory_space<vmem>>, %arg2: memref<2120x32xf32, #tpu.memory_space<vmem>>, %arg3: memref<40x128xf32, #tpu.memory_space<vmem>>, %arg4: memref<2x128xf32, #tpu.memory_space<vmem>>) attributes {dimension_semantics = [], scalar_prefetch = 0 : i64, scratch_operands = 0 : i64, tpu.core_type = #tpu.core_type<tc>} {
    %c0 = arith.constant 0 : index
    %c0_0 = arith.constant 0 : index
    %0 = vector.load %arg0[%c0, %c0_0] : memref<16x1xi32, #tpu.memory_space<vmem>>, vector<16x1xi32>
    %1 = tpu.iota {dimensions = array<i32: 1>} : vector<16x64xi32>
    %2 = vector.broadcast %0 : vector<16x1xi32> to vector<16x64xi32>
    %3 = arith.cmpi eq, %1, %2 : vector<16x64xi32>
    %4 = arith.extui %3 : vector<16x64xi1> to vector<16x64xi32>
    %5 = arith.sitofp %4 : vector<16x64xi32> to vector<16x64xf32>
    %c0_1 = arith.constant 0 : index
    %c0_2 = arith.constant 0 : index
    %6 = vector.load %arg2[%c0_1, %c0_2] : memref<2120x32xf32, #tpu.memory_space<vmem>>, vector<64x32xf32>
    %cst = arith.constant dense<0.000000e+00> : vector<16x32xf32>
    %7 = tpu.matmul %5, %6, %cst {dimension_numbers = #tpu.dot_dimension_numbers<[1], [0], [0], [1], [0, 0, 1, 1], [], []>} : vector<16x64xf32>, vector<64x32xf32>, vector<16x32xf32> -> vector<16x32xf32>
    %c0_3 = arith.constant 0 : index
    %c0_4 = arith.constant 0 : index
    %8 = vector.load %arg1[%c0_3, %c0_4] : memref<2x2048xf32, #tpu.memory_space<vmem>>, vector<2x2048xf32>
    %c64 = arith.constant 64 : index
    %c0_5 = arith.constant 0 : index
    %9 = vector.load %arg2[%c64, %c0_5] : memref<2120x32xf32, #tpu.memory_space<vmem>>, vector<2048x32xf32>
    %cst_6 = arith.constant dense<0.000000e+00> : vector<2x32xf32>
    %10 = tpu.matmul %8, %9, %cst_6 {dimension_numbers = #tpu.dot_dimension_numbers<[1], [0], [0], [1], [0, 0, 1, 1], [], []>} : vector<2x2048xf32>, vector<2048x32xf32>, vector<2x32xf32> -> vector<2x32xf32>
    %c2112 = arith.constant 2112 : index
    %c0_7 = arith.constant 0 : index
    %11 = vector.load %arg2[%c2112, %c0_7] : memref<2120x32xf32, #tpu.memory_space<vmem>>, vector<1x32xf32>
    %12 = vector.broadcast %11 : vector<1x32xf32> to vector<2x32xf32>
    %13 = arith.addf %10, %12 : vector<2x32xf32>
    %cst_8 = arith.constant dense<0.000000e+00> : vector<2x16xf32>
    %14 = tpu.matmul %13, %7, %cst_8 {dimension_numbers = #tpu.dot_dimension_numbers<[1], [1], [0], [0], [0, 0, 1, 0], [], []>} : vector<2x32xf32>, vector<16x32xf32>, vector<2x16xf32> -> vector<2x16xf32>
    %15 = tpu.iota {dimensions = array<i32: 0>} : vector<2x16xi32>
    %16 = tpu.iota {dimensions = array<i32: 1>} : vector<2x16xi32>
    %c8_i32 = arith.constant 8 : i32
    %17 = vector.broadcast %c8_i32 : i32 to vector<2x16xi32>
    %18 = arith.muli %15, %17 : vector<2x16xi32>
    %19 = arith.cmpi sge, %16, %18 : vector<2x16xi32>
    %c1_i32 = arith.constant 1 : i32
    %20 = vector.broadcast %c1_i32 : i32 to vector<2x16xi32>
    %21 = arith.addi %15, %20 : vector<2x16xi32>
    %c8_i32_9 = arith.constant 8 : i32
    %22 = vector.broadcast %c8_i32_9 : i32 to vector<2x16xi32>
    %23 = arith.muli %21, %22 : vector<2x16xi32>
    %24 = arith.cmpi slt, %16, %23 : vector<2x16xi32>
    %25 = arith.andi %19, %24 : vector<2x16xi1>
    %cst_10 = arith.constant dense<0xFF800000> : vector<2xf32>
    %26 = vector.multi_reduction <maximumf>, %14, %cst_10 [1] : vector<2x16xf32> to vector<2xf32>
    %27 = vector.shape_cast %26 : vector<2xf32> to vector<2x1xf32>
    %28 = vector.broadcast %27 : vector<2x1xf32> to vector<2x16xf32>
    %29 = arith.subf %14, %28 : vector<2x16xf32>
    %30 = math.exp %29 : vector<2x16xf32>
    %cst_11 = arith.constant 0.000000e+00 : f32
    %31 = vector.broadcast %cst_11 : f32 to vector<2x16xf32>
    %32 = arith.select %25, %30, %31 : vector<2x16xi1>, vector<2x16xf32>
    %cst_12 = arith.constant dense<0.000000e+00> : vector<2xf32>
    %33 = vector.multi_reduction <add>, %32, %cst_12 [1] : vector<2x16xf32> to vector<2xf32>
    %34 = vector.shape_cast %33 : vector<2xf32> to vector<2x1xf32>
    %35 = tpu.reciprocal %34 {approx = true} : vector<2x1xf32> -> vector<2x1xf32>
    %36 = vector.broadcast %35 : vector<2x1xf32> to vector<2x16xf32>
    %37 = arith.mulf %32, %36 : vector<2x16xf32>
    %cst_13 = arith.constant dense<0.000000e+00> : vector<2x32xf32>
    %38 = tpu.matmul %37, %7, %cst_13 {dimension_numbers = #tpu.dot_dimension_numbers<[1], [0], [0], [1], [0, 0, 1, 1], [], []>} : vector<2x16xf32>, vector<16x32xf32>, vector<2x32xf32> -> vector<2x32xf32>
    %39 = arith.addf %38, %13 : vector<2x32xf32>
    %c0_14 = arith.constant 0 : index
    %c0_15 = arith.constant 0 : index
    %40 = vector.load %arg3[%c0_14, %c0_15] : memref<40x128xf32, #tpu.memory_space<vmem>>, vector<32x128xf32>
    %cst_16 = arith.constant dense<0.000000e+00> : vector<2x128xf32>
    %41 = tpu.matmul %39, %40, %cst_16 {dimension_numbers = #tpu.dot_dimension_numbers<[1], [0], [0], [1], [0, 0, 1, 1], [], []>} : vector<2x32xf32>, vector<32x128xf32>, vector<2x128xf32> -> vector<2x128xf32>
    %c32 = arith.constant 32 : index
    %c0_17 = arith.constant 0 : index
    %42 = vector.load %arg3[%c32, %c0_17] : memref<40x128xf32, #tpu.memory_space<vmem>>, vector<1x128xf32>
    %43 = vector.broadcast %42 : vector<1x128xf32> to vector<2x128xf32>
    %44 = arith.addf %41, %43 : vector<2x128xf32>
    %c0_18 = arith.constant 0 : index
    %c0_19 = arith.constant 0 : index
    %45 = vector.load %arg4[%c0_18, %c0_19] : memref<2x128xf32, #tpu.memory_space<vmem>>, vector<2x128xf32>
    tpu.vector_store %arg4[%c0_18, %c0_19], %44 {strides = array<i32>} : memref<2x128xf32, #tpu.memory_space<vmem>>, vector<2x128xf32>,
    return
  }
}

</mosaic_0001>

<bundles_post_ra>
// kernel: net_forward.1
= control target key start
LH: loop header
LB: loop body
LE: loop exit
PB: predicated region body
PF: predicated region fallthrough
CT: control target
= control target key end

     0   :  { %v1989_v2 = vmov 0   ;;  %v20_v16 = vlaneseq  ;;  %v1990_v17 = vmov 1983009808   ;;  %s2958_s0 = inlined_call_operand.vmem [shape: s32[16,1], index: 0, kind: input, shape index: {}]   ;;  %s2959_s1 = inlined_call_operand.vmem [shape: f32[2,2048], index: 1, kind: input, shape index: {}]   ;;  %s2960_s2 = inlined_call_operand.vmem [shape: f32[2120,32], index: 2, kind: input, shape index: {}]   ;;  %s2961_s3 = inlined_call_operand.vmem [shape: f32[40,128], index: 3, kind: input, shape index: {}]   ;;  %s2962_s4 = inlined_call_operand.hbm [shape: f32[2,128], index: 4, kind: output, shape index: {}]  }
   0x1   :  { %v18_v0 = vld [vmem:[%s2958_s0] sm:$0xff]  ;;  %1956 = vset.pattern.permute.xlu0 %v1989_v2  ;;  %v19_v3 = vld [vmem:[%s2958_s0 + $0x8] sm:$0xff]  ;;  %v146_v9 = vld [vmem:[%s2960_s2 + $0xd0] sm:$0xff]  ;;  %v395_v18 = vunpack.c.l.s4 %v1990_v17 }
   0x2   :  { %v144_v1 = vld [vmem:[%s2960_s2 + $0xc0] sm:$0xff]  ;;  %v145_v4 = vld [vmem:[%s2960_s2 + $0xc8] sm:$0xff]  ;;  %23 = vperm.xlu0 %1956, %v18_v0   ;;  %v147_v10 = vld [vmem:[%s2960_s2 + $0xd8] sm:$0xff]  ;;  %v2081_v31 = vshrl.u32 %v20_v16, 7 }
   0x3   :  { %v128_v5 = vld [vmem:[%s2960_s2 + $0x40] sm:$0xff]  ;;  %v129_v6 = vld [vmem:[%s2960_s2 + $0x48] sm:$0xff]  ;;  %v1681_v7 = vpack.c.bf16 %v145_v4, %v144_v1  ;;  %v130_v11 = vld [vmem:[%s2960_s2 + $0x50] sm:$0xff]  ;;  %v1685_v12 = vpack.c.bf16 %v147_v10, %v146_v9  ;;  %v396_v30 = vunpack.c.0.s8 %v395_v18 }
   0x4   :  { %v1683_v8 = vpack.c.bf16 %v129_v6, %v128_v5  ;;  %v131_v13 = vld [vmem:[%s2960_s2 + $0x58] sm:$0xff]  ;;  %v148_v14 = vld [vmem:[%s2960_s2 + $0xe0] sm:$0xff]  ;;  %v149_v15 = vld [vmem:[%s2960_s2 + $0xe8] sm:$0xff] }
   0x5   :  { %1682 = vmatprep.subr.bf16.mxu1 %v1681_v7  ;;  %v1687_v19 = vpack.c.bf16 %v131_v13, %v130_v11  ;;  %v132_v20 = vld [vmem:[%s2960_s2 + $0x60] sm:$0xff]  ;;  %v1689_v21 = vpack.c.bf16 %v149_v15, %v148_v14  ;;  %v133_v22 = vld [vmem:[%s2960_s2 + $0x68] sm:$0xff]  ;;  %v150_v25 = vld [vmem:[%s2960_s2 + $0xf0] sm:$0xff]  ;;  %v2102_v42 = vsub.s32 %v396_v30, %v2081_v31 }
   0x6   :  { %1684 = vmatpush3.bf16.msra.mxu1 %v1683_v8  ;;  %26 = vperm.xlu0 %1956, %v19_v3   ;;  %v34_v23 = vld [vmem:[%s2960_s2] sm:$0xff]  ;;  %v35_v24 = vld [vmem:[%s2960_s2 + $0x8] sm:$0xff]  ;;  %v151_v26 = vld [vmem:[%s2960_s2 + $0xf8] sm:$0xff]  ;;  %v1691_v32 = vpack.c.bf16 %v133_v22, %v132_v20 }
   0x7   :  { %1686 = vmatprep.subr.bf16.mxu1 %v1685_v12  ;;  %v1665_v27 = vpack.c.bf16 %v35_v24, %v34_v23  ;;  %v36_v28 = vld [vmem:[%s2960_s2 + $0x10] sm:$0xff]  ;;  %v37_v29 = vld [vmem:[%s2960_s2 + $0x18] sm:$0xff]  ;;  %v1693_v35 = vpack.c.bf16 %v151_v26, %v150_v25  ;;  %v38_v37 = vld [vmem:[%s2960_s2 + $0x20] sm:$0xff] }
   0x8   :  { %v134_v33 = vld [vmem:[%s2960_s2 + $0x70] sm:$0xff]  ;;  %v1669_v34 = vpack.c.bf16 %v37_v29, %v36_v28  ;;  %v135_v36 = vld [vmem:[%s2960_s2 + $0x78] sm:$0xff]  ;;  %v39_v38 = vld [vmem:[%s2960_s2 + $0x28] sm:$0xff] }
   0x9   :  { %1666 = vmatprep.subr.bf16.mxu0 %v1665_v27  ;;  %v152_v39 = vld [vmem:[%s2960_s2 + $0x100] sm:$0xff]  ;;  %v153_v40 = vld [vmem:[%s2960_s2 + $0x108] sm:$0xff]  ;;  %v1673_v41 = vpack.c.bf16 %v39_v38, %v38_v37  ;;  %v40_v43 = vld [vmem:[%s2960_s2 + $0x30] sm:$0xff]  ;;  %v1695_v45 = vpack.c.bf16 %v135_v36, %v134_v33 }
   0xa   :  { %1688 = vmatpush3.bf16.msra.mxu1 %v1687_v19  ;;  %1668 = vmatpush3.bf16.msra.mxu0 %v1665_v27  ;;  %v41_v44 = vld [vmem:[%s2960_s2 + $0x38] sm:$0xff]  ;;  %v1697_v46 = vpack.c.bf16 %v153_v40, %v152_v39  ;;  %v136_v47 = vld [vmem:[%s2960_s2 + $0x80] sm:$0xff]  ;;  %v137_v48 = vld [vmem:[%s2960_s2 + $0x88] sm:$0xff] }
   0xb   :  { %1690 = vmatprep.subr.bf16.mxu1 %v1689_v21  ;;  %1670 = vmatprep.subr.bf16.mxu0 %v1669_v34  ;;  %v154_v49 = vld [vmem:[%s2960_s2 + $0x110] sm:$0xff]  ;;  %v155_v50 = vld [vmem:[%s2960_s2 + $0x118] sm:$0xff]  ;;  %v1677_v51 = vpack.c.bf16 %v41_v44, %v40_v43  ;;  %v2125_v52 = vld [vmem:[%s2959_s1] sm:$0xff]  ;;  %v1699_v56 = vpack.c.bf16 %v137_v48, %v136_v47 }
   0xc   :  { %v176_v53 = vld [vmem:[%s2960_s2 + $0x1c0] sm:$0xff]  ;;  %v177_v54 = vld [vmem:[%s2960_s2 + $0x1c8] sm:$0xff]  ;;  %v400_v55 = vrot.slane %v2125_v52, %v2102_v42  ;;  %v1701_v57 = vpack.c.bf16 %v155_v50, %v154_v49  ;;  %v138_v58 = vld [vmem:[%s2960_s2 + $0x90] sm:$0xff] }
   0xd   :  { %v139_v59 = vld [vmem:[%s2960_s2 + $0x98] sm:$0xff]  ;;  %v156_v61 = vld [vmem:[%s2960_s2 + $0x120] sm:$0xff]  ;;  %v157_v62 = vld [vmem:[%s2960_s2 + $0x128] sm:$0xff]  ;;  %v1713_v63 = vpack.c.bf16 %v177_v54, %v176_v53 }
   0xe   :  { %1692 = vmatpush3.bf16.msra.mxu1 %v1691_v32  ;;  %1672 = vmatpush3.bf16.msra.mxu0 %v1669_v34  ;;  %v408_v60 = vcombine.high %v400_v55, %v400_v55  ;;  %v1703_v0 = vpack.c.bf16 %v139_v59, %v138_v58  ;;  %v1705_v1 = vpack.c.bf16 %v157_v62, %v156_v61  ;;  %v140_v2 = vld [vmem:[%s2960_s2 + $0xa0] sm:$0xff]  ;;  %v141_v3 = vld [vmem:[%s2960_s2 + $0xa8] sm:$0xff]  ;;  %v158_v4 = vld [vmem:[%s2960_s2 + $0x130] sm:$0xff] }
   0xf   :  { %1694 = vmatprep.subr.bf16.mxu1 %v1693_v35  ;;  %1674 = vmatprep.subr.bf16.mxu0 %v1673_v41  ;;  %v159_v5 = vld [vmem:[%s2960_s2 + $0x138] sm:$0xff]  ;;  %v1707_v6 = vpack.c.bf16 %v141_v3, %v140_v2  ;;  %v142_v8 = vld [vmem:[%s2960_s2 + $0xb0] sm:$0xff]  ;;  %v208_v10 = vld [vmem:[%s2960_s2 + $0x2c0] sm:$0xff] }
  0x10   :  { %541 = vmatprep.mubr.f32.mxu1 %v408_v60  ;;  %v1709_v7 = vpack.c.bf16 %v159_v5, %v158_v4  ;;  %v143_v9 = vld [vmem:[%s2960_s2 + $0xb8] sm:$0xff]  ;;  %v209_v11 = vld [vmem:[%s2960_s2 + $0x2c8] sm:$0xff]  ;;  %v192_v14 = vld [vmem:[%s2960_s2 + $0x240] sm:$0xff] }
  0x11   :  { %v1711_v12 = vpack.c.bf16 %v143_v9, %v142_v8  ;;  %v1745_v13 = vpack.c.bf16 %v209_v11, %v208_v10  ;;  %v193_v15 = vld [vmem:[%s2960_s2 + $0x248] sm:$0xff]  ;;  %v210_v17 = vld [vmem:[%s2960_s2 + $0x2d0] sm:$0xff]  ;;  %v211_v18 = vld [vmem:[%s2960_s2 + $0x2d8] sm:$0xff] }
  0x12   :  { %1696 = vmatpush3.bf16.msra.mxu1 %v1695_v45  ;;  %1676 = vmatpush3.bf16.msra.mxu0 %v1673_v41  ;;  %v1747_v19 = vpack.c.bf16 %v193_v15, %v192_v14 }
  0x13   :  { %1698 = vmatprep.subr.bf16.mxu1 %v1697_v46  ;;  %1678 = vmatprep.subr.bf16.mxu0 %v1677_v51 }
  0x16   :  { %1700 = vmatpush3.bf16.msra.mxu1 %v1699_v56  ;;  %1680 = vmatpush3.bf16.msra.mxu0 %v1677_v51 }
  0x17   :  { %1702 = vmatprep.subr.bf16.mxu1 %v1701_v57  ;;  %1714 = vmatprep.subr.bf16.mxu0 %v1713_v63 }
  0x1a   :  { %1704 = vmatpush3.bf16.msra.mxu1 %v1703_v0 }
  0x1b   :  { %1706 = vmatprep.subr.bf16.mxu1 %v1705_v1 }
  0x1e   :  { %1708 = vmatpush3.bf16.msra.mxu1 %v1707_v6 }
  0x1f   :  { %1710 = vmatprep.subr.bf16.mxu1 %v1709_v7 }
  0x22   :  { %1712 = vmatpush3.bf16.msra.mxu1 %v1711_v12 }
  0x23   :  { %9 = vsyncpa [#allocation3], 0  ;;  %1746 = vmatprep.subr.bf16.mxu1 %v1745_v13  ;;  %v1749_v20 = vpack.c.bf16 %v211_v18, %v210_v17  ;;  %v194_v21 = vld [vmem:[%s2960_s2 + $0x250] sm:$0xff]  ;;  %v195_v22 = vld [vmem:[%s2960_s2 + $0x258] sm:$0xff]  ;;  %vm42_vm0 = vcmask 523264   ;;  %vm1037_vm3 = vcmask 261120  }
  0x24   :  { %v212_v23 = vld [vmem:[%s2960_s2 + $0x2e0] sm:$0xff]  ;;  %v213_v24 = vld [vmem:[%s2960_s2 + $0x2e8] sm:$0xff]  ;;  %v1751_v26 = vpack.c.bf16 %v195_v22, %v194_v21  ;;  %v214_v32 = vld [vmem:[%s2960_s2 + $0x2f0] sm:$0xff]  ;;  %vm1993_vm5 = vmmov 0   ;;  %vm1125_vm6 = vcmask 123904   ;;  %vm1138_vm10 = vcmask 130048  }
  0x25   :  { %542 = vmatmul.mubr.f32.vlgmr.msra.gmra.mrb[0].mxu1 %v400_v55  ;;  %v2198_v25 = vld [vmem:[%s2959_s1 + $0x8] sm:$0xff]  ;;  %v1753_v28 = vpack.c.bf16 %v213_v24, %v212_v23  ;;  %v196_v29 = vld [vmem:[%s2960_s2 + $0x260] sm:$0xff]  ;;  %v215_v33 = vld [vmem:[%s2960_s2 + $0x2f8] sm:$0xff]  ;;  %s1994_s15 = smov [#allocation2]  }
  0x26   :  { %1748 = vmatpush3.bf16.msra.mxu1 %v1747_v19  ;;  %v2202_v27 = vrot.slane %v2198_v25, %v2102_v42  ;;  %v197_v30 = vld [vmem:[%s2960_s2 + $0x268] sm:$0xff]  ;;  %v1757_v36 = vpack.c.bf16 %v215_v33, %v214_v32  ;;  %v198_v37 = vld [vmem:[%s2960_s2 + $0x270] sm:$0xff]  ;;  %v199_v38 = vld [vmem:[%s2960_s2 + $0x278] sm:$0xff]  ;;  %s1301_s16 = sshll.u32 %s1994_s15, 4  ;;  %s1302_s16 = int_to_ptr.vmem [resolvable:$true] %s1301_s16 }
  0x27   :  { %1750 = vmatprep.subr.bf16.mxu1 %v1749_v20  ;;  %v1755_v35 = vpack.c.bf16 %v197_v30, %v196_v29  ;;  %v216_v39 = vld [vmem:[%s2960_s2 + $0x300] sm:$0xff]  ;;  %v217_v40 = vld [vmem:[%s2960_s2 + $0x308] sm:$0xff]  ;;  %v1759_v41 = vpack.c.bf16 %v199_v38, %v198_v37  ;;  %v218_v46 = vld [vmem:[%s2960_s2 + $0x310] sm:$0xff]  ;;  %s1965_s17 = scalar_lea.vmem %s1302_s16, 32  ;;  %p1970_p1 = scmp.lt.s32.totalorder %s1302_s16, %s1302_s16 }
  0x28   :  { %v425_v34 = vcombine.high %v2202_v27, %v2202_v27  ;;  %v1761_v43 = vpack.c.bf16 %v217_v40, %v216_v39  ;;  %v200_v44 = vld [vmem:[%s2960_s2 + $0x280] sm:$0xff]  ;;  %v201_v45 = vld [vmem:[%s2960_s2 + $0x288] sm:$0xff]  ;;  %v219_v47 = vld [vmem:[%s2960_s2 + $0x318] sm:$0xff]  ;;  %p1966_p0 = scmp.ne.s32.totalorder %s1302_s16, %s1965_s17  ;;  %p1971_p2 = scmp.lt.s32.totalorder %s1965_s17, %s1965_s17 }
  0x29   :  { %v1763_v48 = vpack.c.bf16 %v201_v45, %v200_v44  ;;  %v1765_v49 = vpack.c.bf16 %v219_v47, %v218_v46  ;;  %v202_v50 = vld [vmem:[%s2960_s2 + $0x290] sm:$0xff]  ;;  %v203_v51 = vld [vmem:[%s2960_s2 + $0x298] sm:$0xff]  ;;  %v220_v53 = vld [vmem:[%s2960_s2 + $0x320] sm:$0xff] }
  0x2a   :  { %1752 = vmatpush3.bf16.msra.mxu1 %v1751_v26  ;;  %681 = vmatprep.mubr.f32.mxu1 %v425_v34  ;;  %v221_v54 = vld [vmem:[%s2960_s2 + $0x328] sm:$0xff]  ;;  %v1767_v55 = vpack.c.bf16 %v203_v51, %v202_v50  ;;  %v204_v57 = vld [vmem:[%s2960_s2 + $0x2a0] sm:$0xff]  ;;  %v222_v59 = vld [vmem:[%s2960_s2 + $0x330] sm:$0xff]  ;;  %p1972_p3 = por %p1971_p2, %p1970_p1 }
  0x2b   :  { %1754 = vmatprep.subr.bf16.mxu1 %v1753_v28  ;;  %v1769_v56 = vpack.c.bf16 %v221_v54, %v220_v53  ;;  %v205_v58 = vld [vmem:[%s2960_s2 + $0x2a8] sm:$0xff]  ;;  %v223_v60 = vld [vmem:[%s2960_s2 + $0x338] sm:$0xff]  ;;  %v206_v63 = vld [vmem:[%s2960_s2 + $0x2b0] sm:$0xff] }
  0x2c   :  { %v1771_v61 = vpack.c.bf16 %v205_v58, %v204_v57  ;;  %v1773_v62 = vpack.c.bf16 %v223_v60, %v222_v59  ;;  %v207_v0 = vld [vmem:[%s2960_s2 + $0x2b8] sm:$0xff]  ;;  %v272_v1 = vld [vmem:[%s2960_s2 + $0x4c0] sm:$0xff]  ;;  %v273_v2 = vld [vmem:[%s2960_s2 + $0x4c8] sm:$0xff]  ;;  %p1973_p4 = pnand %p1972_p3, %p1966_p0 }
  0x2d   :  { %v1775_v3 = vpack.c.bf16 %v207_v0, %v206_v63  ;;  %v1809_v4 = vpack.c.bf16 %v273_v2, %v272_v1  ;;  %v256_v5 = vld [vmem:[%s2960_s2 + $0x440] sm:$0xff]  ;;  %v257_v6 = vld [vmem:[%s2960_s2 + $0x448] sm:$0xff]  ;;  %v274_v7 = vld [vmem:[%s2960_s2 + $0x4d0] sm:$0xff] }
  0x2e   :  { %1756 = vmatpush3.bf16.msra.mxu1 %v1755_v35  ;;  %v275_v8 = vld [vmem:[%s2960_s2 + $0x4d8] sm:$0xff]  ;;  %v1811_v9 = vpack.c.bf16 %v257_v6, %v256_v5  ;;  %v258_v11 = vld [vmem:[%s2960_s2 + $0x450] sm:$0xff]  ;;  %v276_v13 = vld [vmem:[%s2960_s2 + $0x4e0] sm:$0xff] }
  0x2f   :  { %1758 = vmatprep.subr.bf16.mxu1 %v1757_v36  ;;  %v1813_v10 = vpack.c.bf16 %v275_v8, %v274_v7  ;;  %v259_v12 = vld [vmem:[%s2960_s2 + $0x458] sm:$0xff]  ;;  %v277_v14 = vld [vmem:[%s2960_s2 + $0x4e8] sm:$0xff]  ;;  %v2306_v15 = vld [vmem:[%s2959_s1 + $0x10] sm:$0xff] }
  0x30   :  { %v1815_v17 = vpack.c.bf16 %v259_v12, %v258_v11  ;;  %v2310_v18 = vrot.slane %v2306_v15, %v2102_v42  ;;  %v1817_v19 = vpack.c.bf16 %v277_v14, %v276_v13  ;;  %v260_v20 = vld [vmem:[%s2960_s2 + $0x460] sm:$0xff]  ;;  %v261_v21 = vld [vmem:[%s2960_s2 + $0x468] sm:$0xff]  ;;  %v278_v22 = vld [vmem:[%s2960_s2 + $0x4f0] sm:$0xff] }
  0x31   :  { %v279_v23 = vld [vmem:[%s2960_s2 + $0x4f8] sm:$0xff]  ;;  %v1819_v26 = vpack.c.bf16 %v261_v21, %v260_v20  ;;  %v262_v28 = vld [vmem:[%s2960_s2 + $0x470] sm:$0xff]  ;;  %v280_v30 = vld [vmem:[%s2960_s2 + $0x500] sm:$0xff] }
  0x32   :  { %1760 = vmatpush3.bf16.msra.mxu1 %v1759_v41  ;;  %v442_v24 = vcombine.high %v2310_v18, %v2310_v18  ;;  %v263_v29 = vld [vmem:[%s2960_s2 + $0x478] sm:$0xff]  ;;  %v281_v32 = vld [vmem:[%s2960_s2 + $0x508] sm:$0xff]  ;;  %v264_v35 = vld [vmem:[%s2960_s2 + $0x480] sm:$0xff] }
  0x33   :  { %1762 = vmatprep.subr.bf16.mxu1 %v1761_v43  ;;  %v1823_v33 = vpack.c.bf16 %v263_v29, %v262_v28  ;;  %v1825_v34 = vpack.c.bf16 %v281_v32, %v280_v30  ;;  %v265_v36 = vld [vmem:[%s2960_s2 + $0x488] sm:$0xff]  ;;  %v282_v37 = vld [vmem:[%s2960_s2 + $0x510] sm:$0xff]  ;;  %v283_v38 = vld [vmem:[%s2960_s2 + $0x518] sm:$0xff] }
  0x34   :  { %v1827_v39 = vpack.c.bf16 %v265_v36, %v264_v35  ;;  %v1829_v40 = vpack.c.bf16 %v283_v38, %v282_v37  ;;  %v266_v41 = vld [vmem:[%s2960_s2 + $0x490] sm:$0xff]  ;;  %v267_v43 = vld [vmem:[%s2960_s2 + $0x498] sm:$0xff]  ;;  %v284_v44 = vld [vmem:[%s2960_s2 + $0x520] sm:$0xff] }
  0x35   :  { %v285_v45 = vld [vmem:[%s2960_s2 + $0x528] sm:$0xff]  ;;  %v1831_v46 = vpack.c.bf16 %v267_v43, %v266_v41  ;;  %v286_v50 = vld [vmem:[%s2960_s2 + $0x530] sm:$0xff]  ;;  %v287_v51 = vld [vmem:[%s2960_s2 + $0x538] sm:$0xff] }
  0x36   :  { %1764 = vmatpush3.bf16.msra.mxu1 %v1763_v48  ;;  %v1833_v47 = vpack.c.bf16 %v285_v45, %v284_v44  ;;  %v268_v48 = vld [vmem:[%s2960_s2 + $0x4a0] sm:$0xff]  ;;  %v1837_v54 = vpack.c.bf16 %v287_v51, %v286_v50  ;;  %v337_v58 = vld [vmem:[%s2960_s2 + $0x6c8] sm:$0xff]  ;;  %v338_v63 = vld [vmem:[%s2960_s2 + $0x6d0] sm:$0xff]  ;;  %v2491_v51 = vand.u32 127, %v20_v16 }
  0x37   :  { %1766 = vmatprep.subr.bf16.mxu1 %v1765_v49  ;;  %v269_v49 = vld [vmem:[%s2960_s2 + $0x4a8] sm:$0xff]  ;;  %v336_v57 = vld [vmem:[%s2960_s2 + $0x6c0] sm:$0xff]  ;;  %v339_v0 = vld [vmem:[%s2960_s2 + $0x6d8] sm:$0xff] }
  0x38   :  { %v1835_v53 = vpack.c.bf16 %v269_v49, %v268_v48  ;;  %v1873_v60 = vpack.c.bf16 %v337_v58, %v336_v57  ;;  %v1877_v2 = vpack.c.bf16 %v339_v0, %v338_v63  ;;  %v340_v5 = vld [vmem:[%s2960_s2 + $0x6e0] sm:$0xff]  ;;  %v341_v6 = vld [vmem:[%s2960_s2 + $0x6e8] sm:$0xff]  ;;  %v2414_v7 = vld [vmem:[%s2959_s1 + $0x18] sm:$0xff]  ;;  %v393_v49 = vcombine.high %v2125_v52, %v2125_v52 }
  0x39   :  { %v324_v11 = vld [vmem:[%s2960_s2 + $0x660] sm:$0xff]  ;;  %v325_v12 = vld [vmem:[%s2960_s2 + $0x668] sm:$0xff]  ;;  %v342_v13 = vld [vmem:[%s2960_s2 + $0x6f0] sm:$0xff] }
  0x3a   :  { %1768 = vmatpush3.bf16.msra.mxu1 %v1767_v55  ;;  %v270_v55 = vld [vmem:[%s2960_s2 + $0x4b0] sm:$0xff]  ;;  %v343_v14 = vld [vmem:[%s2960_s2 + $0x6f8] sm:$0xff]  ;;  %v329_v28 = vld [vmem:[%s2960_s2 + $0x688] sm:$0xff] }
  0x3b   :  { %1770 = vmatprep.subr.bf16.mxu1 %v1769_v56  ;;  %v271_v56 = vld [vmem:[%s2960_s2 + $0x4b8] sm:$0xff]  ;;  %v326_v20 = vld [vmem:[%s2960_s2 + $0x670] sm:$0xff]  ;;  %v348_v36 = vld [vmem:[%s2960_s2 + $0x720] sm:$0xff] }
  0x3c   :  { %v1839_v59 = vpack.c.bf16 %v271_v56, %v270_v55  ;;  %v327_v21 = vld [vmem:[%s2960_s2 + $0x678] sm:$0xff]  ;;  %v346_v29 = vld [vmem:[%s2960_s2 + $0x710] sm:$0xff]  ;;  %v349_v37 = vld [vmem:[%s2960_s2 + $0x728] sm:$0xff]  ;;  %v1991_v56 = vmov 0.0  }
  0x3d   :  { %v347_v30 = vld [vmem:[%s2960_s2 + $0x718] sm:$0xff]  ;;  %v333_v41 = vld [vmem:[%s2960_s2 + $0x6a8] sm:$0xff]  ;;  %v350_v43 = vld [vmem:[%s2960_s2 + $0x730] sm:$0xff] }
  0x3e   :  { %1772 = vmatpush3.bf16.msra.mxu1 %v1771_v61  ;;  %v320_v61 = vld [vmem:[%s2960_s2 + $0x640] sm:$0xff]  ;;  %v331_v35 = vld [vmem:[%s2960_s2 + $0x698] sm:$0xff]  ;;  %v161_v52 = vld [vmem:[%s2960_s2 + $0x148] sm:$0xff] }
  0x3f   :  { %1774 = vmatprep.subr.bf16.mxu1 %v1773_v62  ;;  %v321_v62 = vld [vmem:[%s2960_s2 + $0x648] sm:$0xff]  ;;  %v351_v44 = vld [vmem:[%s2960_s2 + $0x738] sm:$0xff]  ;;  %v160_v55 = vld [vmem:[%s2960_s2 + $0x140] sm:$0xff] }
  0x40   :  { %v1875_v1 = vpack.c.bf16 %v321_v62, %v320_v61  ;;  %v335_v48 = vld [vmem:[%s2960_s2 + $0x6b8] sm:$0xff]  ;;  %v178_v57 = vld [vmem:[%s2960_s2 + $0x1d0] sm:$0xff]  ;;  %vm1939_vm4 = vmpackc.low %vm1037_vm3, %vm1037_vm3 }
  0x41   :  { %v179_v58 = vld [vmem:[%s2960_s2 + $0x1d8] sm:$0xff]  ;;  %v162_v63 = vld [vmem:[%s2960_s2 + $0x150] sm:$0xff] }
  0x42   :  { %1776 = vmatpush3.bf16.msra.mxu1 %v1775_v3  ;;  %v322_v3 = vld [vmem:[%s2960_s2 + $0x650] sm:$0xff]  ;;  %v1717_v62 = vpack.c.bf16 %v179_v58, %v178_v57  ;;  %v163_v0 = vld [vmem:[%s2960_s2 + $0x158] sm:$0xff] }
  0x43   :  { %1810 = vmatprep.subr.bf16.mxu1 %v1809_v4  ;;  %v323_v4 = vld [vmem:[%s2960_s2 + $0x658] sm:$0xff]  ;;  %v226_v58 = vld [vmem:[%s2960_s2 + $0x350] sm:$0xff] }
  0x44   :  { %v1879_v8 = vpack.c.bf16 %v323_v4, %v322_v3  ;;  %v181_v3 = vld [vmem:[%s2960_s2 + $0x1e8] sm:$0xff]  ;;  %v1719_v4 = vpack.c.bf16 %v163_v0, %v162_v63  ;;  %v228_v0 = vld [vmem:[%s2960_s2 + $0x360] sm:$0xff] }
  0x45   :  { %682 = vmatmul.mubr.f32.vlgmr.msra.gmra.mrb[2].mxu1 %v2202_v27  ;;  %v1821_v27 = vpack.c.bf16 %v279_v23, %v278_v22  ;;  %v344_v22 = vld [vmem:[%s2960_s2 + $0x700] sm:$0xff]  ;;  %v345_v23 = vld [vmem:[%s2960_s2 + $0x708] sm:$0xff] }
  0x46   :  { %1812 = vmatpush3.bf16.msra.mxu1 %v1811_v9  ;;  %821 = vmatprep.mubr.f32.mxu1 %v442_v24  ;;  %v2418_v9 = vrot.slane %v2414_v7, %v2102_v42  ;;  %v1887_v24 = vpack.c.bf16 %v327_v21, %v326_v20  ;;  %v168_v21 = vld [vmem:[%s2960_s2 + $0x180] sm:$0xff] }
  0x47   :  { %1814 = vmatprep.subr.bf16.mxu1 %v1813_v10  ;;  %v1881_v10 = vpack.c.bf16 %v341_v6, %v340_v5  ;;  %v164_v6 = vld [vmem:[%s2960_s2 + $0x160] sm:$0xff] }
  0x4a   :  { %1816 = vmatpush3.bf16.msra.mxu1 %v1815_v17  ;;  %v459_v17 = vcombine.high %v2418_v9, %v2418_v9 }
  0x4b   :  { %1818 = vmatprep.subr.bf16.mxu1 %v1817_v19  ;;  %v1885_v19 = vpack.c.bf16 %v343_v14, %v342_v13  ;;  %v166_v13 = vld [vmem:[%s2960_s2 + $0x170] sm:$0xff]  ;;  %v167_v14 = vld [vmem:[%s2960_s2 + $0x178] sm:$0xff] }
  0x4e   :  { %1820 = vmatpush3.bf16.msra.mxu1 %v1819_v26  ;;  %v1889_v26 = vpack.c.bf16 %v345_v23, %v344_v22  ;;  %v169_v22 = vld [vmem:[%s2960_s2 + $0x188] sm:$0xff]  ;;  %v186_v23 = vld [vmem:[%s2960_s2 + $0x210] sm:$0xff] }
  0x4f   :  { %1822 = vmatprep.subr.bf16.mxu1 %v1821_v27  ;;  %v328_v27 = vld [vmem:[%s2960_s2 + $0x680] sm:$0xff] }
  0x50   :  { %v1891_v32 = vpack.c.bf16 %v329_v28, %v328_v27  ;;  %v170_v28 = vld [vmem:[%s2960_s2 + $0x190] sm:$0xff] }
  0x52   :  { %1824 = vmatpush3.bf16.msra.mxu1 %v1823_v33  ;;  %v1893_v33 = vpack.c.bf16 %v347_v30, %v346_v29  ;;  %v171_v29 = vld [vmem:[%s2960_s2 + $0x198] sm:$0xff]  ;;  %v188_v30 = vld [vmem:[%s2960_s2 + $0x220] sm:$0xff] }
  0x53   :  { %1826 = vmatprep.subr.bf16.mxu1 %v1825_v34  ;;  %v330_v34 = vld [vmem:[%s2960_s2 + $0x690] sm:$0xff] }
  0x54   :  { %v1895_v38 = vpack.c.bf16 %v331_v35, %v330_v34  ;;  %v172_v35 = vld [vmem:[%s2960_s2 + $0x1a0] sm:$0xff] }
  0x56   :  { %1828 = vmatpush3.bf16.msra.mxu1 %v1827_v39  ;;  %v1897_v39 = vpack.c.bf16 %v349_v37, %v348_v36  ;;  %v173_v36 = vld [vmem:[%s2960_s2 + $0x1a8] sm:$0xff]  ;;  %v190_v37 = vld [vmem:[%s2960_s2 + $0x230] sm:$0xff] }
  0x57   :  { %1830 = vmatprep.subr.bf16.mxu1 %v1829_v40  ;;  %v332_v40 = vld [vmem:[%s2960_s2 + $0x6a0] sm:$0xff] }
  0x58   :  { %v1899_v45 = vpack.c.bf16 %v333_v41, %v332_v40  ;;  %v410_v40 = vcombine.high %v2198_v25, %v2198_v25 }
  0x5a   :  { %1832 = vmatpush3.bf16.msra.mxu1 %v1831_v46  ;;  %v1901_v46 = vpack.c.bf16 %v351_v44, %v350_v43  ;;  %v174_v43 = vld [vmem:[%s2960_s2 + $0x1b0] sm:$0xff]  ;;  %v175_v44 = vld [vmem:[%s2960_s2 + $0x1b8] sm:$0xff] }
  0x5b   :  { %1834 = vmatprep.subr.bf16.mxu1 %v1833_v47  ;;  %v334_v47 = vld [vmem:[%s2960_s2 + $0x6b0] sm:$0xff]  ;;  %v1743_v25 = vpack.c.bf16 %v175_v44, %v174_v43  ;;  %v289_v43 = vld [vmem:[%s2960_s2 + $0x548] sm:$0xff] }
  0x5c   :  { %v1903_v50 = vpack.c.bf16 %v335_v48, %v334_v47  ;;  %v2604_v47 = vrot.slane %v410_v40, %v2102_v42  ;;  %v306_v44 = vld [vmem:[%s2960_s2 + $0x5d0] sm:$0xff] }
  0x5e   :  { %1836 = vmatpush3.bf16.msra.mxu1 %v1835_v53 }
  0x5f   :  { %1838 = vmatprep.subr.bf16.mxu1 %v1837_v54  ;;  %v2494_v54 = vrot.slane %v393_v49, %v2102_v42  ;;  %v224_v49 = vld [vmem:[%s2960_s2 + $0x340] sm:$0xff] }
  0x61   :  { %v409_v61 = vcombine.high %v2494_v54, %v2494_v54 }
  0x62   :  { %1840 = vmatpush3.bf16.msra.mxu1 %v1839_v59 }
  0x63   :  { %1874 = vmatprep.subr.bf16.mxu1 %v1873_v60  ;;  %v1715_v60 = vpack.c.bf16 %v161_v52, %v160_v55  ;;  %v243_v55 = vld [vmem:[%s2960_s2 + $0x3d8] sm:$0xff] }
  0x65   :  { %822 = vmatmul.mubr.f32.vlgmr.msra.gmra.mrb[4].mxu1 %v2310_v18  ;;  %v1883_v18 = vpack.c.bf16 %v325_v12, %v324_v11 }
  0x66   :  { %1876 = vmatpush3.bf16.msra.mxu1 %v1875_v1  ;;  %961 = vmatprep.mubr.f32.mxu1 %v459_v17  ;;  %v184_v17 = vld [vmem:[%s2960_s2 + $0x200] sm:$0xff] }
  0x67   :  { %1878 = vmatprep.subr.bf16.mxu1 %v1877_v2  ;;  %v180_v2 = vld [vmem:[%s2960_s2 + $0x1e0] sm:$0xff] }
  0x68   :  { %v1721_v5 = vpack.c.bf16 %v181_v3, %v180_v2  ;;  %v246_v2 = vld [vmem:[%s2960_s2 + $0x3f0] sm:$0xff] }
  0x6a   :  { %1880 = vmatpush3.bf16.msra.mxu1 %v1879_v8  ;;  %v165_v8 = vld [vmem:[%s2960_s2 + $0x168] sm:$0xff] }
  0x6b   :  { %1882 = vmatprep.subr.bf16.mxu1 %v1881_v10  ;;  %v183_v10 = vld [vmem:[%s2960_s2 + $0x1f8] sm:$0xff]  ;;  %v1723_v11 = vpack.c.bf16 %v165_v8, %v164_v6  ;;  %v248_v8 = vld [vmem:[%s2960_s2 + $0x400] sm:$0xff] }
  0x6c   :  { %v231_v6 = vld [vmem:[%s2960_s2 + $0x378] sm:$0xff] }
  0x6e   :  { %1884 = vmatpush3.bf16.msra.mxu1 %v1883_v18  ;;  %v185_v18 = vld [vmem:[%s2960_s2 + $0x208] sm:$0xff] }
  0x6f   :  { %1886 = vmatprep.subr.bf16.mxu1 %v1885_v19  ;;  %v1727_v19 = vpack.c.bf16 %v167_v14, %v166_v13  ;;  %v1729_v20 = vpack.c.bf16 %v185_v18, %v184_v17  ;;  %v233_v13 = vld [vmem:[%s2960_s2 + $0x388] sm:$0xff]  ;;  %v250_v14 = vld [vmem:[%s2960_s2 + $0x410] sm:$0xff]  ;;  %v251_v17 = vld [vmem:[%s2960_s2 + $0x418] sm:$0xff] }
  0x72   :  { %1888 = vmatpush3.bf16.msra.mxu1 %v1887_v24  ;;  %v187_v24 = vld [vmem:[%s2960_s2 + $0x218] sm:$0xff] }
  0x73   :  { %1890 = vmatprep.subr.bf16.mxu1 %v1889_v26  ;;  %v1731_v26 = vpack.c.bf16 %v169_v22, %v168_v21  ;;  %v1733_v27 = vpack.c.bf16 %v187_v24, %v186_v23  ;;  %v235_v21 = vld [vmem:[%s2960_s2 + $0x398] sm:$0xff]  ;;  %v252_v22 = vld [vmem:[%s2960_s2 + $0x420] sm:$0xff]  ;;  %v253_v23 = vld [vmem:[%s2960_s2 + $0x428] sm:$0xff] }
  0x76   :  { %1892 = vmatpush3.bf16.msra.mxu1 %v1891_v32  ;;  %v189_v32 = vld [vmem:[%s2960_s2 + $0x228] sm:$0xff] }
  0x77   :  { %1894 = vmatprep.subr.bf16.mxu1 %v1893_v33  ;;  %v1735_v33 = vpack.c.bf16 %v171_v29, %v170_v28  ;;  %v1737_v34 = vpack.c.bf16 %v189_v32, %v188_v30  ;;  %v237_v28 = vld [vmem:[%s2960_s2 + $0x3a8] sm:$0xff]  ;;  %v254_v29 = vld [vmem:[%s2960_s2 + $0x430] sm:$0xff]  ;;  %v255_v30 = vld [vmem:[%s2960_s2 + $0x438] sm:$0xff] }
  0x7a   :  { %1896 = vmatpush3.bf16.msra.mxu1 %v1895_v38  ;;  %v191_v38 = vld [vmem:[%s2960_s2 + $0x238] sm:$0xff] }
  0x7b   :  { %1898 = vmatprep.subr.bf16.mxu1 %v1897_v39  ;;  %v1739_v39 = vpack.c.bf16 %v173_v36, %v172_v35  ;;  %v1741_v41 = vpack.c.bf16 %v191_v38, %v190_v37  ;;  %v238_v35 = vld [vmem:[%s2960_s2 + $0x3b0] sm:$0xff]  ;;  %v239_v36 = vld [vmem:[%s2960_s2 + $0x3b8] sm:$0xff]  ;;  %v304_v37 = vld [vmem:[%s2960_s2 + $0x5c0] sm:$0xff] }
  0x7c   :  { %v305_v38 = vld [vmem:[%s2960_s2 + $0x5c8] sm:$0xff] }
  0x7d   :  { %v1841_v40 = vpack.c.bf16 %v305_v38, %v304_v37  ;;  %v371_v37 = vld [vmem:[%s2960_s2 + $0x7d8] sm:$0xff] }
  0x7e   :  { %1900 = vmatpush3.bf16.msra.mxu1 %v1899_v45  ;;  %v240_v45 = vld [vmem:[%s2960_s2 + $0x3c0] sm:$0xff] }
  0x7f   :  { %1902 = vmatprep.subr.bf16.mxu1 %v1901_v46  ;;  %v241_v46 = vld [vmem:[%s2960_s2 + $0x3c8] sm:$0xff] }
  0x80   :  { %v1777_v48 = vpack.c.bf16 %v241_v46, %v240_v45  ;;  %v307_v45 = vld [vmem:[%s2960_s2 + $0x5d8] sm:$0xff] }
  0x81   :  { %v24_v53 = vpop.permute.xlu0 %23 }
  0x82   :  { %1904 = vmatpush3.bf16.msra.mxu1 %v1903_v50  ;;  %vm28_vm1 = vcmp.eq.s32.totalorder %v2491_v51, %v24_v53  ;;  %v225_v50 = vld [vmem:[%s2960_s2 + $0x348] sm:$0xff]  ;;  %v242_v53 = vld [vmem:[%s2960_s2 + $0x3d0] sm:$0xff] }
  0x83   :  { %v1309_v16 = vsel %vm28_vm1, 1.0, %v1991_v56  ;;  %v1779_v52 = vpack.c.bf16 %v225_v50, %v224_v49  ;;  %v1781_v57 = vpack.c.bf16 %v243_v55, %v242_v53  ;;  %v290_v49 = vld [vmem:[%s2960_s2 + $0x550] sm:$0xff]  ;;  %v291_v50 = vld [vmem:[%s2960_s2 + $0x558] sm:$0xff]  ;;  %v308_v53 = vld [vmem:[%s2960_s2 + $0x5e0] sm:$0xff] }
  0x84   :  { %1637 = vmatprep.mubr.msk.f32.mxu0 %vm42_vm0, %v1309_v16  ;;  %v426_v16 = vcombine.high %v2604_v47, %v2604_v47  ;;  %v309_v55 = vld [vmem:[%s2960_s2 + $0x5e8] sm:$0xff] }
  0x85   :  { %962 = vmatmul.mubr.f32.vlgmr.msra.gmra.mrb[6].mxu1 %v2418_v9  ;;  %v27_v59 = vpop.permute.xlu0 %26  ;;  %v182_v9 = vld [vmem:[%s2960_s2 + $0x1f0] sm:$0xff] }
  0x86   :  { %vm29_vm2 = vcmp.eq.s32.totalorder %v2491_v51, %v27_v59  ;;  %v1725_v12 = vpack.c.bf16 %v183_v10, %v182_v9  ;;  %v227_v59 = vld [vmem:[%s2960_s2 + $0x358] sm:$0xff]  ;;  %v249_v9 = vld [vmem:[%s2960_s2 + $0x408] sm:$0xff]  ;;  %1644 = vmatprep.mubr.msk.f32.mxu1 %vm1993_vm5, %v1991_v56 }
  0x87   :  { %v1310_v1 = vsel %vm29_vm2, 1.0, %v1991_v56 }
  0x88   :  { %1638 = vmatmul.mubr.msk.f32.vlgmr.msra.gmra.mrb[0].mxu0 %vm42_vm0, %v1310_v1  ;;  %v229_v1 = vld [vmem:[%s2960_s2 + $0x368] sm:$0xff] }
  0x89   :  { %1716 = vmatpush3.bf16.msra.mxu0 %v1715_v60  ;;  %611 = vmatprep.mubr.f32.mxu0 %v409_v61  ;;  %v244_v60 = vld [vmem:[%s2960_s2 + $0x3e0] sm:$0xff]  ;;  %v245_v61 = vld [vmem:[%s2960_s2 + $0x3e8] sm:$0xff]  ;;  %v1787_v3 = vpack.c.bf16 %v229_v1, %v228_v0 }
  0x8a   :  { %1718 = vmatprep.subr.bf16.mxu0 %v1717_v62  ;;  %v1783_v62 = vpack.c.bf16 %v227_v59, %v226_v58  ;;  %v1785_v63 = vpack.c.bf16 %v245_v61, %v244_v60  ;;  %v293_v58 = vld [vmem:[%s2960_s2 + $0x568] sm:$0xff]  ;;  %v310_v59 = vld [vmem:[%s2960_s2 + $0x5f0] sm:$0xff]  ;;  %v312_v0 = vld [vmem:[%s2960_s2 + $0x600] sm:$0xff] }
  0x8b   :  { %v313_v1 = vld [vmem:[%s2960_s2 + $0x608] sm:$0xff] }
  0x8d   :  { %1720 = vmatpush3.bf16.msra.mxu0 %v1719_v4 }
  0x8e   :  { %1722 = vmatprep.subr.bf16.mxu0 %v1721_v5  ;;  %v230_v5 = vld [vmem:[%s2960_s2 + $0x370] sm:$0xff] }
  0x8f   :  { %v1791_v10 = vpack.c.bf16 %v231_v6, %v230_v5  ;;  %v314_v5 = vld [vmem:[%s2960_s2 + $0x610] sm:$0xff]  ;;  %v315_v6 = vld [vmem:[%s2960_s2 + $0x618] sm:$0xff] }
  0x91   :  { %1724 = vmatpush3.bf16.msra.mxu0 %v1723_v11  ;;  %v1793_v11 = vpack.c.bf16 %v249_v9, %v248_v8  ;;  %v1861_v9 = vpack.c.bf16 %v315_v6, %v314_v5 }
  0x92   :  { %1726 = vmatprep.subr.bf16.mxu0 %v1725_v12  ;;  %v232_v12 = vld [vmem:[%s2960_s2 + $0x380] sm:$0xff] }
  0x93   :  { %v1795_v18 = vpack.c.bf16 %v233_v13, %v232_v12  ;;  %v316_v12 = vld [vmem:[%s2960_s2 + $0x620] sm:$0xff]  ;;  %v317_v13 = vld [vmem:[%s2960_s2 + $0x628] sm:$0xff] }
  0x95   :  { %1728 = vmatpush3.bf16.msra.mxu0 %v1727_v19  ;;  %v1797_v19 = vpack.c.bf16 %v251_v17, %v250_v14  ;;  %v1865_v17 = vpack.c.bf16 %v317_v13, %v316_v12  ;;  %v382_v12 = vld [vmem:[%s2960_s2 + $0x830] sm:$0xff]  ;;  %v383_v13 = vld [vmem:[%s2960_s2 + $0x838] sm:$0xff] }
  0x96   :  { %1730 = vmatprep.subr.bf16.mxu0 %v1729_v20  ;;  %v234_v20 = vld [vmem:[%s2960_s2 + $0x390] sm:$0xff] }
  0x97   :  { %v1799_v24 = vpack.c.bf16 %v235_v21, %v234_v20  ;;  %v318_v20 = vld [vmem:[%s2960_s2 + $0x630] sm:$0xff]  ;;  %v319_v21 = vld [vmem:[%s2960_s2 + $0x638] sm:$0xff] }
  0x99   :  { %1732 = vmatpush3.bf16.msra.mxu0 %v1731_v26  ;;  %v1801_v26 = vpack.c.bf16 %v253_v23, %v252_v22  ;;  %v444_v23 = vcombine.high %v2414_v7, %v2414_v7  ;;  %v369_v7 = vld [vmem:[%s2960_s2 + $0x7c8] sm:$0xff] }
  0x9a   :  { %1734 = vmatprep.subr.bf16.mxu0 %v1733_v27  ;;  %v236_v27 = vld [vmem:[%s2960_s2 + $0x3a0] sm:$0xff] }
  0x9b   :  { %v1803_v32 = vpack.c.bf16 %v237_v28, %v236_v27  ;;  %v303_v27 = vld [vmem:[%s2960_s2 + $0x5b8] sm:$0xff]  ;;  %v1992_v28 = vmov 0.0|0.0  }
  0x9c   :  { %1937 = vmatprep.subr.bf16.mxu1 %v1992_v28 }
  0x9d   :  { %1736 = vmatpush3.bf16.msra.mxu0 %v1735_v33  ;;  %v427_v33 = vcombine.high %v2306_v15, %v2306_v15  ;;  %v1807_v15 = vpack.c.bf16 %v239_v36, %v238_v35  ;;  %v353_v35 = vld [vmem:[%s2960_s2 + $0x748] sm:$0xff]  ;;  %v370_v36 = vld [vmem:[%s2960_s2 + $0x7d0] sm:$0xff] }
  0x9e   :  { %1738 = vmatprep.subr.bf16.mxu0 %v1737_v34  ;;  %v1805_v34 = vpack.c.bf16 %v255_v30, %v254_v29  ;;  %v368_v29 = vld [vmem:[%s2960_s2 + $0x7c0] sm:$0xff] }
  0xa1   :  { %1740 = vmatpush3.bf16.msra.mxu0 %v1739_v39  ;;  %v2708_v39 = vrot.slane %v427_v33, %v2102_v42  ;;  %v1905_v33 = vpack.c.bf16 %v369_v7, %v368_v29 }
  0xa2   :  { %1742 = vmatprep.subr.bf16.mxu0 %v1741_v41  ;;  %v288_v41 = vld [vmem:[%s2960_s2 + $0x540] sm:$0xff] }
  0xa3   :  { %v1843_v46 = vpack.c.bf16 %v289_v43, %v288_v41  ;;  %v355_v41 = vld [vmem:[%s2960_s2 + $0x758] sm:$0xff]  ;;  %v372_v43 = vld [vmem:[%s2960_s2 + $0x7e0] sm:$0xff] }
  0xa5   :  { %1744 = vmatpush3.bf16.msra.mxu0 %v1743_v25  ;;  %v443_v25 = vcombine.high %v2708_v39, %v2708_v39 }
  0xa6   :  { %1778 = vmatprep.subr.bf16.mxu0 %v1777_v48  ;;  %v1845_v48 = vpack.c.bf16 %v307_v45, %v306_v44  ;;  %v373_v44 = vld [vmem:[%s2960_s2 + $0x7e8] sm:$0xff] }
  0xa8   :  { %612 = vmatmul.mubr.f32.vlgmr.msra.gmra.mrb[2].mxu0 %v2494_v54  ;;  %v247_v54 = vld [vmem:[%s2960_s2 + $0x3f8] sm:$0xff] }
  0xa9   :  { %1780 = vmatpush3.bf16.msra.mxu0 %v1779_v52  ;;  %751 = vmatprep.mubr.f32.mxu0 %v426_v16  ;;  %v1789_v4 = vpack.c.bf16 %v247_v54, %v246_v2  ;;  %v1847_v52 = vpack.c.bf16 %v291_v50, %v290_v49  ;;  %v1849_v16 = vpack.c.bf16 %v309_v55, %v308_v53  ;;  %v374_v49 = vld [vmem:[%s2960_s2 + $0x7f0] sm:$0xff] }
  0xaa   :  { %1782 = vmatprep.subr.bf16.mxu0 %v1781_v57  ;;  %v292_v57 = vld [vmem:[%s2960_s2 + $0x560] sm:$0xff]  ;;  %v1857_v54 = vpack.c.bf16 %v313_v1, %v312_v0  ;;  %v358_v55 = vld [vmem:[%s2960_s2 + $0x770] sm:$0xff] }
  0xab   :  { %v1851_v60 = vpack.c.bf16 %v293_v58, %v292_v57  ;;  %v377_v57 = vld [vmem:[%s2960_s2 + $0x808] sm:$0xff]  ;;  %v362_v1 = vld [vmem:[%s2960_s2 + $0x790] sm:$0xff] }
  0xad   :  { %1784 = vmatpush3.bf16.msra.mxu0 %v1783_v62  ;;  %v294_v62 = vld [vmem:[%s2960_s2 + $0x570] sm:$0xff] }
  0xae   :  { %1786 = vmatprep.subr.bf16.mxu0 %v1785_v63  ;;  %v295_v63 = vld [vmem:[%s2960_s2 + $0x578] sm:$0xff] }
  0xaf   :  { %v1855_v2 = vpack.c.bf16 %v295_v63, %v294_v62  ;;  %v379_v62 = vld [vmem:[%s2960_s2 + $0x818] sm:$0xff] }
  0xb1   :  { %1788 = vmatpush3.bf16.msra.mxu0 %v1787_v3  ;;  %v296_v3 = vld [vmem:[%s2960_s2 + $0x580] sm:$0xff] }
  0xb2   :  { %1790 = vmatprep.subr.bf16.mxu0 %v1789_v4  ;;  %v297_v4 = vld [vmem:[%s2960_s2 + $0x588] sm:$0xff] }
  0xb3   :  { %v1859_v8 = vpack.c.bf16 %v297_v4, %v296_v3  ;;  %v381_v3 = vld [vmem:[%s2960_s2 + $0x828] sm:$0xff] }
  0xb5   :  { %1792 = vmatpush3.bf16.msra.mxu0 %v1791_v10  ;;  %v298_v10 = vld [vmem:[%s2960_s2 + $0x590] sm:$0xff] }
  0xb6   :  { %1794 = vmatprep.subr.bf16.mxu0 %v1793_v11  ;;  %v299_v11 = vld [vmem:[%s2960_s2 + $0x598] sm:$0xff] }
  0xb7   :  { %v1863_v14 = vpack.c.bf16 %v299_v11, %v298_v10  ;;  %v364_v10 = vld [vmem:[%s2960_s2 + $0x7a0] sm:$0xff]  ;;  %v365_v11 = vld [vmem:[%s2960_s2 + $0x7a8] sm:$0xff] }
  0xb9   :  { %1796 = vmatpush3.bf16.msra.mxu0 %v1795_v18  ;;  %v300_v18 = vld [vmem:[%s2960_s2 + $0x5a0] sm:$0xff] }
  0xba   :  { %1798 = vmatprep.subr.bf16.mxu0 %v1797_v19  ;;  %v301_v19 = vld [vmem:[%s2960_s2 + $0x5a8] sm:$0xff] }
  0xbb   :  { %v1867_v22 = vpack.c.bf16 %v301_v19, %v300_v18  ;;  %v366_v18 = vld [vmem:[%s2960_s2 + $0x7b0] sm:$0xff]  ;;  %v367_v19 = vld [vmem:[%s2960_s2 + $0x7b8] sm:$0xff] }
  0xbd   :  { %1800 = vmatpush3.bf16.msra.mxu0 %v1799_v24  ;;  %v1869_v24 = vpack.c.bf16 %v319_v21, %v318_v20  ;;  %v1935_v20 = vpack.c.bf16 %v367_v19, %v366_v18 }
  0xbe   :  { %1802 = vmatprep.subr.bf16.mxu0 %v1801_v26  ;;  %v302_v26 = vld [vmem:[%s2960_s2 + $0x5b0] sm:$0xff] }
  0xbf   :  { %v1871_v30 = vpack.c.bf16 %v303_v27, %v302_v26 }
  0xc1   :  { %1804 = vmatpush3.bf16.msra.mxu0 %v1803_v32  ;;  %v2813_v32 = vrot.slane %v444_v23, %v2102_v42 }
  0xc2   :  { %1806 = vmatprep.subr.bf16.mxu0 %v1805_v34  ;;  %v352_v34 = vld [vmem:[%s2960_s2 + $0x740] sm:$0xff] }
  0xc3   :  { %v1907_v42 = vpack.c.bf16 %v353_v35, %v352_v34  ;;  %v460_v38 = vcombine.high %v2813_v32, %v2813_v32 }
  0xc5   :  { %1808 = vmatpush3.bf16.msra.mxu0 %v1807_v15  ;;  %v1909_v15 = vpack.c.bf16 %v371_v37, %v370_v36 }
  0xc6   :  { %1842 = vmatprep.subr.bf16.mxu0 %v1841_v40  ;;  %v354_v40 = vld [vmem:[%s2960_s2 + $0x750] sm:$0xff] }
  0xc7   :  { %v1911_v45 = vpack.c.bf16 %v355_v41, %v354_v40 }
  0xc8   :  { %752 = vmatmul.mubr.f32.vlgmr.msra.gmra.mrb[4].mxu0 %v2604_v47  ;;  %v311_v47 = vld [vmem:[%s2960_s2 + $0x5f8] sm:$0xff] }
  0xc9   :  { %1844 = vmatpush3.bf16.msra.mxu0 %v1843_v46  ;;  %891 = vmatprep.mubr.f32.mxu0 %v443_v25  ;;  %v1853_v61 = vpack.c.bf16 %v311_v47, %v310_v59  ;;  %v1913_v46 = vpack.c.bf16 %v373_v44, %v372_v43  ;;  %v356_v25 = vld [vmem:[%s2960_s2 + $0x760] sm:$0xff] }
  0xca   :  { %1846 = vmatprep.subr.bf16.mxu0 %v1845_v48  ;;  %v357_v48 = vld [vmem:[%s2960_s2 + $0x768] sm:$0xff]  ;;  %v360_v47 = vld [vmem:[%s2960_s2 + $0x780] sm:$0xff] }
  0xcb   :  { %v1915_v50 = vpack.c.bf16 %v357_v48, %v356_v25 }
  0xcd   :  { %1848 = vmatpush3.bf16.msra.mxu0 %v1847_v52  ;;  %v359_v52 = vld [vmem:[%s2960_s2 + $0x778] sm:$0xff] }
  0xce   :  { %1850 = vmatprep.subr.bf16.mxu0 %v1849_v16  ;;  %v376_v16 = vld [vmem:[%s2960_s2 + $0x800] sm:$0xff]  ;;  %v1919_v58 = vpack.c.bf16 %v359_v52, %v358_v55 }
  0xcf   :  { %v1921_v59 = vpack.c.bf16 %v377_v57, %v376_v16 }
  0xd1   :  { %1852 = vmatpush3.bf16.msra.mxu0 %v1851_v60  ;;  %v361_v60 = vld [vmem:[%s2960_s2 + $0x788] sm:$0xff] }
  0xd2   :  { %1854 = vmatprep.subr.bf16.mxu0 %v1853_v61  ;;  %v378_v61 = vld [vmem:[%s2960_s2 + $0x810] sm:$0xff]  ;;  %v1923_v63 = vpack.c.bf16 %v361_v60, %v360_v47 }
  0xd3   :  { %v1925_v0 = vpack.c.bf16 %v379_v62, %v378_v61  ;;  %v1121_v61 = vadd.s32 1, %v2081_v31 }
  0xd5   :  { %1856 = vmatpush3.bf16.msra.mxu0 %v1855_v2  ;;  %v363_v2 = vld [vmem:[%s2960_s2 + $0x798] sm:$0xff] }
  0xd6   :  { %1858 = vmatprep.subr.bf16.mxu0 %v1857_v54  ;;  %v380_v54 = vld [vmem:[%s2960_s2 + $0x820] sm:$0xff]  ;;  %v1927_v6 = vpack.c.bf16 %v363_v2, %v362_v1 }
  0xd9   :  { %1860 = vmatpush3.bf16.msra.mxu0 %v1859_v8 }
  0xda   :  { %1862 = vmatprep.subr.bf16.mxu0 %v1861_v9  ;;  %v1929_v9 = vpack.c.bf16 %v381_v3, %v380_v54 }
  0xdd   :  { %1864 = vmatpush3.bf16.msra.mxu0 %v1863_v14  ;;  %v1931_v14 = vpack.c.bf16 %v365_v11, %v364_v10 }
  0xde   :  { %1866 = vmatprep.subr.bf16.mxu0 %v1865_v17  ;;  %v1933_v17 = vpack.c.bf16 %v383_v13, %v382_v12 }
  0xe1   :  { %1868 = vmatpush3.bf16.msra.mxu0 %v1867_v22 }
  0xe2   :  { %1870 = vmatprep.subr.bf16.mxu0 %v1869_v24 }
  0xe5   :  { %1872 = vmatpush3.bf16.msra.mxu0 %v1871_v30 }
  0xe6   :  { %1906 = vmatprep.subr.bf16.mxu0 %v1905_v33 }
  0xe8   :  { %892 = vmatmul.mubr.f32.vlgmr.msra.gmra.mrb[6].mxu0 %v2708_v39  ;;  %v375_v39 = vld [vmem:[%s2960_s2 + $0x7f8] sm:$0xff] }
  0xe9   :  { %1908 = vmatpush3.bf16.msra.mxu0 %v1907_v42  ;;  %1031 = vmatprep.mubr.f32.mxu0 %v460_v38  ;;  %v1917_v53 = vpack.c.bf16 %v375_v39, %v374_v49 }
  0xea   :  { %1910 = vmatprep.subr.bf16.mxu0 %v1909_v15 }
  0xed   :  { %1912 = vmatpush3.bf16.msra.mxu0 %v1911_v45 }
  0xee   :  { %1914 = vmatprep.subr.bf16.mxu0 %v1913_v46 }
  0xf1   :  { %1916 = vmatpush3.bf16.msra.mxu0 %v1915_v50 }
  0xf2   :  { %1918 = vmatprep.subr.bf16.mxu0 %v1917_v53 }
  0xf5   :  { %1920 = vmatpush3.bf16.msra.mxu0 %v1919_v58 }
  0xf6   :  { %1922 = vmatprep.subr.bf16.mxu0 %v1921_v59 }
  0xf8   :  { %v1362_v4 = vpop.f32.mrb[0].mxu1 }
  0xf9   :  { %v1363_v5 = vpop.f32.mrb[1].mxu1  ;;  %1924 = vmatpush3.bf16.msra.mxu0 %v1923_v63  ;;  %v1119_v63 = vmul.u32 8, %v2081_v31  ;;  %v1213_v31 = vld [vmem:[%s2961_s3 + $0x8] sm:$0xff] }
  0xfa   :  { %v1364_v8 = vadd.f32 %v1363_v5, %v1362_v4  ;;  %1926 = vmatprep.subr.bf16.mxu0 %v1925_v0  ;;  %v1122_v0 = vmul.u32 8, %v1121_v61  ;;  %v1212_v4 = vld [vmem:[%s2961_s3] sm:$0xff] }
  0xfb   :  { %vm1120_vm7 = vcmp.ge.s32.totalorder %v2491_v51, %v1119_v63 }
  0xfc   :  { %vm1123_vm8 = vcmp.lt.s32.totalorder %v2491_v51, %v1122_v0 }
  0xfd   :  { %1928 = vmatpush3.bf16.msra.mxu0 %v1927_v6  ;;  %vm1124_vm9 = vmand %vm1120_vm7, %vm1123_vm8  ;;  %v1945_v6 = vpack.c.bf16 %v1213_v31, %v1212_v4 }
  0xfe   :  { %1930 = vmatprep.subr.bf16.mxu0 %v1929_v9  ;;  %v1215_v9 = vld [vmem:[%s2961_s3 + $0x18] sm:$0xff] }
 0x101   :  { %1932 = vmatpush3.bf16.msra.mxu0 %v1931_v14 }
 0x102   :  { %1934 = vmatprep.subr.bf16.mxu0 %v1933_v17 }
 0x105   :  { %1936 = vmatpush3.bf16.msra.mxu0 %v1935_v20 }
 0x108   :  { %1032 = vmatmul.mubr.f32.vlgmr.msra.gmra.mrb[8].mxu0 %v2813_v32  ;;  %v1313_v32 = vld [vmem:[%s2960_s2 + $0x840] ss:$0 sm:$0xff] }
 0x109   :  { %v544_v36 = vadd.f32 %v1364_v8, %v1313_v32  ;;  %v1214_v8 = vld [vmem:[%s2961_s3 + $0x10] sm:$0xff] }
 0x10a   :  { %v1948_v10 = vpack.c.bf16 %v1215_v9, %v1214_v8 }
 0x118   :  { %v1432_v21 = vpop.f32.mrb[2].mxu1 }
 0x119   :  { %v1433_v22 = vpop.f32.mrb[3].mxu1 }
 0x11a   :  { %v1434_v23 = vadd.f32 %v1433_v22, %v1432_v21 }
 0x138   :  { %v1502_v24 = vpop.f32.mrb[4].mxu1 }
 0x139   :  { %v1503_v26 = vpop.f32.mrb[5].mxu1 }
 0x13a   :  { %v1504_v27 = vadd.f32 %v1503_v26, %v1502_v24 }
 0x158   :  { %v1572_v29 = vpop.f32.mrb[6].mxu1 }
 0x159   :  { %v1573_v7 = vpop.f32.mrb[7].mxu1 }
 0x15a   :  { %v1574_v30 = vadd.f32 %v1573_v7, %v1572_v29 }
 0x15b   :  { %v1639_v33 = vpop.f32.mrb[0].mxu0 }
 0x15c   :  { %v115_v34 = vpop.f32.mrb[1].mxu0 }
 0x15d   :  { %v1938_v35 = vpack.c.bf16 %v1639_v33, %v115_v34 }
 0x15f   :  { %1940 = vmatpush3.bf16.xpose.msk.msra.mxu1 %vm1939_vm4, %v1938_v35 }
 0x160   :  { %1941 = vmatprep.subr.bf16.mxu1 %v1992_v28 }
 0x17b   :  { %v1397_v37 = vpop.f32.mrb[2].mxu0 }
 0x17c   :  { %v1398_v42 = vpop.f32.mrb[3].mxu0 }
 0x17d   :  { %v1399_v38 = vadd.f32 %v1398_v42, %v1397_v37 }
 0x17f   :  { %v614_v15 = vadd.f32 %v1399_v38, %v544_v36 }
 0x181   :  { %v684_v40 = vadd.f32 %v1434_v23, %v614_v15 }
 0x19b   :  { %v1467_v41 = vpop.f32.mrb[4].mxu0 }
 0x19c   :  { %v1468_v43 = vpop.f32.mrb[5].mxu0 }
 0x19d   :  { %v1469_v44 = vadd.f32 %v1468_v43, %v1467_v41 }
 0x19f   :  { %v754_v45 = vadd.f32 %v1469_v44, %v684_v40 }
 0x1a1   :  { %v824_v46 = vadd.f32 %v1504_v27, %v754_v45 }
 0x1bb   :  { %v1537_v25 = vpop.f32.mrb[6].mxu0 }
 0x1bc   :  { %v1538_v48 = vpop.f32.mrb[7].mxu0 }
 0x1bd   :  { %v1539_v49 = vadd.f32 %v1538_v48, %v1537_v25 }
 0x1bf   :  { %v894_v39 = vadd.f32 %v1539_v49, %v824_v46 }
 0x1c1   :  { %v964_v50 = vadd.f32 %v1574_v30, %v894_v39 }
 0x1db   :  { %v1607_v53 = vpop.f32.mrb[8].mxu0 }
 0x1dc   :  { %v1608_v55 = vpop.f32.mrb[9].mxu0 }
 0x1dd   :  { %v1609_v52 = vadd.f32 %v1608_v55, %v1607_v53 }
 0x1df   :  { %v1034_v16 = vadd.f32 %v1609_v52, %v964_v50 }
 0x1e1   :  { %1645 = vmatmul.mubr.msk.f32.vlgmr.msra.gmra.mrb[8].mxu1 %vm1037_vm3, %v1034_v16 }
 0x1e2   :  { %1943 = vmatpush3.bf16.msra.mxu1 %v1938_v35  ;;  %1651 = vmatprep.mubr.msk.f32.mxu1 %vm1993_vm5, %v1991_v56 }
 0x1e3   :  { %1944 = vmatprep.subr.bf16.mxu1 %v1992_v28 }
 0x2b4   :  { %v1113_v57 = vpop.f32.mrb[8].mxu1 }
 0x2b5   :  { %v1646_v58 = vpop.f32.mrb[9].mxu1  ;;  %v1126_v59 = vsel %vm1125_vm6, %v1113_v57, -inf }
 0x2b6   :  { %1127 = vmax.xlane.f32.xlu1 %v1126_v59 }
 0x343   :  { %v1128_v47 = vpop.xlane.xlu1 %1127 }
 0x344   :  { %v1129_v60 = vsub.f32 %v1113_v57, %v1128_v47 }
 0x346   :  { %v1130_v62 = vmul.f32 1.442695, %v1129_v60 }
 0x348   :  { %1961 = vpow2.f32 %v1130_v62 }
 0x352   :  { %v1962_v1 = vpop.eup %1961 }
 0x353   :  { %v1132_v2 = vsel %vm1124_vm9, %v1962_v1, 0.0 }
 0x354   :  { %v1133_v54 = vsel %vm1125_vm6, %v1132_v2, 0.0 }
 0x355   :  { %1134 = vadd.xlane.f32.xlu1 %v1133_v54 }
 0x3e2   :  { %v1135_v3 = vpop.xlane.xlu1 %1134 }
 0x3e3   :  { %1963 = vrcp.f32 %v1135_v3 }
 0x3ed   :  { %v1964_v5 = vpop.eup %1963 }
 0x3ee   :  { %v1137_v51 = vmul.f32 %v1964_v5, %v1132_v2 }
 0x3f0   :  { %1652 = vmatmul.mubr.msk.f32.vlgmr.msra.gmra.mrb[10].mxu1 %vm1138_vm10, %v1137_v51 }
 0x3f1   :  { %1946 = vmatpush3.bf16.msra.mxu1 %v1945_v6  ;;  %1662 = vmatprep.mubr.msk.f32.mxu1 %vm1993_vm5, %v1991_v56  ;;  %v1318_v56 = vld [vmem:[%s2961_s3 + $0x20] ss:$0 sm:$0xff] }
 0x3f2   :  { %1947 = vmatprep.subr.bf16.mxu1 %v1992_v28 }
 0x3f5   :  { %1949 = vmatpush3.bf16.msra.mxu1 %v1948_v10 }
 0x4c3   :  { %v1208_v11 = vpop.f32.mrb[10].mxu1 }
 0x4c4   :  { %v1209_v12 = vadd.f32 %v1208_v11, %v1034_v16  ;;  %v1653_v13 = vpop.f32.mrb[11].mxu1 }
 0x4c6   :  { %1663 = vmatmul.mubr.msk.f32.vlgmr.msra.gmra.mrb[12].mxu1 %vm1037_vm3, %v1209_v12 }
 0x599   :  { %v1290_v28 = vpop.f32.mrb[12].mxu1 }
 0x59a   :  { %v1291_v14 = vadd.f32 %v1318_v56, %v1290_v28  ;;  %v1664_v17 = vpop.f32.mrb[13].mxu1 }
 0x59c   :  { %1294 = vst [vmem:[#allocation2] sm:$0x3] %v1291_v14 }
 0x59d   :  { %1976 = shalt.err (!%p1973_p4)
}
 0x59e   :  { %s1977_s20 = scalar_lea.hbm %s2962_s4, 32 }
 0x59f   :  { %p1978_p5 = scmp.ne.s32.totalorder %s2962_s4, %s1977_s20  ;;  %p1981_p6 = scmp.lt.u32.totalorder %s1977_s20, %s2962_s4 }
 0x5a1   :  { %p1983_p7 = pnand %p1981_p6, %p1978_p5 }
 0x5a3   :  { %1986 = shalt.err (!%p1983_p7)
}
 0x5a4   :  { %1304 = dma.vmem_to_hbm [thread:$0]  %s1302_s16, 32, %s2962_s4, [#allocation3]  }
 0x5a5   :  { %1987 = dma.done.wait [#allocation3], 32  }
 0x5a6   :  { %1988 = vsyncadd [#allocation3], 4294967264 }
 0x5a7   :  { %1308 = vsyncpa [#allocation3], 1 }

</bundles_post_ra>
